<compile_context>
chip_gen: v6e
topology: v6e:2x2x1
jax: 0.10.0
libtpu: 0.0.40
codegen_flags: <defaults>
</compile_context>

<pallas_src>
import functools

import jax
import jax.numpy as jnp
from jax.experimental import pallas as pl
from jax.experimental.pallas import tpu as pltpu

EPS = 1e-5


# --------------------------------------------------------------------------- #
# Tiling / budget helpers
# --------------------------------------------------------------------------- #
def _pick_row_strip(H, W, max_flat):
    """Largest row-strip th | H with th*W % 128 == 0 and th*W <= max_flat."""
    aligned = [t for t in range(1, H + 1) if H % t == 0 and (t * W) % 128 == 0]
    fitting = [t for t in aligned if t * W <= max_flat]
    if fitting:
        return max(fitting)
    if aligned:
        return min(aligned)
    return H  # fallback: whole image per strip (block last dim == full HW dim)


def _pick_cout_block(C_out, target):
    """Largest multiple-of-8 divisor of C_out that is <= target (else C_out)."""
    cands = [c for c in range(8, min(C_out, target) + 1, 8) if C_out % c == 0]
    return max(cands) if cands else C_out


def _vmem_cap_bytes():
    """Generation-aware scoped-VMEM cap (~3/4 of physical per-core VMEM)."""
    try:
        info = pltpu.get_tpu_info()
        phys = int(getattr(info, "vmem_capacity_bytes", 0) or 0)
    except Exception:
        phys = 0
    if phys <= 0:
        phys = 64 << 20  # conservative (v7x) default if the query is unavailable
    return max(32 << 20, (phys * 3) // 4)


# --------------------------------------------------------------------------- #
# Pass 1: in-kernel im2col + MXU conv + Welford per-channel stats
# --------------------------------------------------------------------------- #
def _conv_stats_kernel(x_ref, w_ref, y_ref, stats_ref, acc_ref, *, k, th, out_w, inv_hw):
    # x_ref:     (1, C_in, Hp, Wp) bf16  reflect-padded image, resident per n
    # w_ref:     (coutb, CKK)      bf16  conv weight (tap-major, channel-minor)
    # y_ref:     (1, coutb, L)     bf16  pre-norm conv output strip (L = th*out_w)
    # stats_ref: (1, coutb, 2)     f32   [mean, rstd] (written on last strip)
    # acc_ref:   (coutb, 2)        f32   running Welford [mean, M2]
    r = pl.program_id(2)
    c_in = x_ref.shape[1]
    halo = k - 1
    L = th * out_w

    row0 = r * th
    if th % 8 == 0:
        row0 = pl.multiple_of(row0, 8)

    # Halo'd row strip of the resident padded image: (C_in, th+halo, Wp).
    xs = x_ref[:, :, pl.ds(row0, th + halo), :][0]

    # In-VMEM im2col: 9 shifted taps, flattened to (CKK, L) with tap-major rows
    # (matches the wrapper's weight transpose); only minor-dim merges / axis-0 concat.
    taps = [
        xs[:, i:i + th, j:j + out_w].reshape(c_in, L)
        for i in range(k) for j in range(k)
    ]
    p = jnp.concatenate(taps, axis=0)  # (k*k*C_in, L)

    # Conv as one MXU matmul: bf16 operands, f32 accumulation.  Bias omitted —
    # cancelled exactly by the affine-free InstanceNorm mean subtraction.
    y = jnp.dot(w_ref[...], p, preferred_element_type=jnp.float32)  # (coutb, L) f32
    y_ref[0] = y.astype(y_ref.dtype)  # bf16 stash (stats taken from f32 below)

    # Per-strip statistics in f32, Welford-merged across strips (avoids the
    # E[y^2]-E[y]^2 catastrophic-cancellation path).
    mean_b = jnp.sum(y, axis=1, keepdims=True) * (1.0 / L)               # (coutb, 1)
    m2_b = jnp.sum((y - mean_b) ** 2, axis=1, keepdims=True)             # (coutb, 1)

    @pl.when(r == 0)
    def _():
        acc_ref[...] = jnp.concatenate([mean_b, m2_b], axis=1)

    @pl.when(r > 0)
    def _():
        mean_a = acc_ref[:, 0:1]
        m2_a = acc_ref[:, 1:2]
        rf = r.astype(jnp.float32)            # n_a = r*L, n_b = L (all strips full)
        delta = mean_b - mean_a
        mean = mean_a + delta * (1.0 / (rf + 1.0))
        m2 = m2_a + m2_b + (delta * delta) * (L * rf / (rf + 1.0))
        acc_ref[...] = jnp.concatenate([mean, m2], axis=1)

    @pl.when(r == pl.num_programs(2) - 1)
    def _():
        mean = acc_ref[:, 0:1]
        var = jnp.maximum(acc_ref[:, 1:2] * inv_hw, 0.0)
        rstd = jax.lax.rsqrt(var + EPS)
        stats_ref[0] = jnp.concatenate([mean, rstd], axis=1)


# --------------------------------------------------------------------------- #
# Pass 2: normalize + ReLU (pure stream)
# --------------------------------------------------------------------------- #
def _norm_relu_kernel(stats_ref, y_ref, o_ref):
    # stats_ref: (1, coutb, 2) f32, y_ref: (1, coutb, L) bf16, o_ref: (1, coutb, L) f32
    mean = stats_ref[0, :, 0:1]
    rstd = stats_ref[0, :, 1:2]
    y = y_ref[0].astype(jnp.float32)
    o_ref[0] = jnp.maximum((y - mean) * rstd, 0.0).astype(o_ref.dtype)


# --------------------------------------------------------------------------- #
# Wrapper
# --------------------------------------------------------------------------- #
def conv_block_forward(x, weight, bias=None, *, k=3, pad=1,
                       max_flat_tile=1024, max_cout_block=128):
    """x: (N, C_in, H, W) f32. weight: (C_out, C_in, k, k). bias ignored (cancelled)."""
    del bias  # cancelled exactly by InstanceNorm2d(affine=False)
    N, C_in, H, W = x.shape
    C_out = weight.shape[0]
    assert weight.shape == (C_out, C_in, k, k)
    assert 2 * pad == k - 1, "only the stride-1 'same' Conv2d path is kernelized"
    HW = H * W
    CKK = C_in * k * k
    Hp, Wp = H + 2 * pad, W + 2 * pad

    # Only host-side layout plumbing: one fused reflect-pad + bf16 cast (~1x input).
    x_pad = jnp.pad(x, ((0, 0), (0, 0), (pad, pad), (pad, pad)), mode="reflect")
    x_pad = x_pad.astype(jnp.bfloat16)
    # Tap-major / channel-minor contraction layout -> in-kernel patch build needs
    # only an axis-0 concat + minor-dim merge (no leading-dim relayout).
    w2d = jnp.transpose(weight, (0, 2, 3, 1)).reshape(C_out, CKK).astype(jnp.bfloat16)

    th = _pick_row_strip(H, W, max_flat_tile)      # rows per strip, th | H
    L = th * W                                     # lane-dense flat tile (128-mult.)
    n_rs = H // th
    coutb = _pick_cout_block(C_out, max_cout_block)
    n_cb = C_out // coutb

    # VMEM budget: resident image + weight + y tile (double-buffered) + in-kernel
    # patch temporaries, clamped to a generation-aware cap.
    vmem_cap = _vmem_cap_bytes()
    p1_need = (2 * C_in * Hp * Wp * 2 + 2 * coutb * CKK * 2 + 2 * coutb * L * 2
               + 3 * CKK * L * 2 + 2 * coutb * L * 4 + (4 << 20))
    vmem_limit = int(min(max(p1_need, 16 << 20), vmem_cap))

    # ---- pass 1: conv matmul (in-kernel im2col) + Welford per-channel stats ----
    y, stats = pl.pallas_call(
        functools.partial(_conv_stats_kernel, k=k, th=th, out_w=W, inv_hw=1.0 / HW),
        out_shape=(
            jax.ShapeDtypeStruct((N, C_out, HW), jnp.bfloat16),   # pre-norm stash
            jax.ShapeDtypeStruct((N, C_out, 2), jnp.float32),     # [mean, rstd]
        ),
        grid_spec=pltpu.PrefetchScalarGridSpec(
            num_scalar_prefetch=0,
            grid=(N, n_cb, n_rs),
            in_specs=[
                # padded image: constant block index across (cb, r) -> stays resident,
                # DMA'd from HBM exactly once per batch element.
                pl.BlockSpec((1, C_in, Hp, Wp), lambda n, cb, r: (n, 0, 0, 0)),
                pl.BlockSpec((coutb, CKK), lambda n, cb, r: (cb, 0)),
            ],
            out_specs=[
                pl.BlockSpec((1, coutb, L), lambda n, cb, r: (n, cb, r)),
                pl.BlockSpec((1, coutb, 2), lambda n, cb, r: (n, cb, 0)),
            ],
            scratch_shapes=[pltpu.VMEM((coutb, 2), jnp.float32)],
        ),
        compiler_params=pltpu.CompilerParams(
            # N and Cout-blocks shard across v7x's 2 TCs even when N==1;
            # row strips are the (ordered) stats reduction.
            dimension_semantics=("parallel", "parallel", "arbitrary"),
            vmem_limit_bytes=vmem_limit,
        ),
    )(x_pad, w2d)

    # ---- pass 2: normalize + ReLU (fully parallel, lane-dense bf16 stream in) ----
    out = pl.pallas_call(
        _norm_relu_kernel,
        out_shape=jax.ShapeDtypeStruct((N, C_out, HW), jnp.float32),
        grid_spec=pltpu.PrefetchScalarGridSpec(
            num_scalar_prefetch=0,
            grid=(N, n_cb, n_rs),
            in_specs=[
                pl.BlockSpec((1, coutb, 2), lambda n, cb, r: (n, cb, 0)),
                pl.BlockSpec((1, coutb, L), lambda n, cb, r: (n, cb, r),
                             pipeline_mode=pl.Buffered(3)),
            ],
            out_specs=pl.BlockSpec((1, coutb, L), lambda n, cb, r: (n, cb, r)),
        ),
        compiler_params=pltpu.CompilerParams(
            dimension_semantics=("parallel", "parallel", "parallel"),
            vmem_limit_bytes=vmem_limit,
        ),
    )(stats, y)

    # Output is already channel-major flat HW -> (N, Cout, H, W). No transpose.
    return out.reshape(N, C_out, H, W)


# --------------------------------------------------------------------------- #
# Reference + test
# --------------------------------------------------------------------------- #
def _reference(x, weight, bias, *, k=3, pad=1):
    """Pure-JAX f32 reference (reflect-pad conv + bias + instance norm + relu)."""
    x_pad = jnp.pad(x, ((0, 0), (0, 0), (pad, pad), (pad, pad)), mode="reflect")
    y = jax.lax.conv_general_dilated(
        x_pad, weight, window_strides=(1, 1), padding="VALID",
        dimension_numbers=("NCHW", "OIHW", "NCHW"),
    ) + bias.reshape(1, -1, 1, 1)
    mean = y.mean(axis=(2, 3), keepdims=True)
    var = ((y - mean) ** 2).mean(axis=(2, 3), keepdims=True)
    y = (y - mean) / jnp.sqrt(var + EPS)
    return jnp.maximum(y, 0.0)


if __name__ == "__main__":
    key = jax.random.PRNGKey(0)
    N, C_in, C_out, H, W = 2, 4, 8, 16, 16
    K = 3

    kx, kw, kb = jax.random.split(key, 3)
    x = jax.random.normal(kx, (N, C_in, H, W), dtype=jnp.float32)
    fan_in = C_in * K * K
    weight = jax.random.normal(kw, (C_out, C_in, K, K), dtype=jnp.float32) / jnp.sqrt(fan_in)
    bias = jax.random.normal(kb, (C_out,), dtype=jnp.float32) * 0.1

    # max_flat_tile=128 -> two 8-row strips per image: exercises the Welford merge path.
    out = conv_block_forward(x, weight, bias, k=K, pad=1, max_flat_tile=128)
    out = jax.block_until_ready(out)

    ref = _reference(x, weight, bias, k=K, pad=1)
    assert out.shape == (N, C_out, H, W)
    max_err = float(jnp.abs(out - ref).max())
    # bf16 MXU operands + bf16 pre-norm stash -> bf16-appropriate tolerance.
    assert jnp.allclose(out, ref, atol=5e-2, rtol=5e-2), max_err

    print("KERNEL_OK")
</pallas_src>

<mosaic_0001>
module attributes {stable_mosaic.version = 11 : i64} {
  func.func @_conv_stats_kernel(%arg0: i32, %arg1: i32, %arg2: i32, %arg3: memref<1x4x18x18xbf16, #tpu.memory_space<vmem>>, %arg4: memref<8x36xbf16, #tpu.memory_space<vmem>>, %arg5: memref<1x8x128xbf16, #tpu.memory_space<vmem>>, %arg6: memref<1x8x2xf32, #tpu.memory_space<vmem>>, %arg7: memref<8x2xf32, #tpu.memory_space<vmem>>) attributes {dimension_semantics = [#tpu.dimension_semantics<parallel>, #tpu.dimension_semantics<parallel>, #tpu.dimension_semantics<arbitrary>], iteration_bounds = array<i64: 2, 1, 2>, scalar_prefetch = 0 : i64, scratch_operands = 1 : i64, tpu.core_type = #tpu.core_type<tc>, window_params = [{transform_indices = @transform_0, window_bounds = array<i64: 1, 4, 18, 18>}, {transform_indices = @transform_1, window_bounds = array<i64: 8, 36>}, {transform_indices = @transform_2, window_bounds = array<i64: 1, 8, 128>}, {transform_indices = @transform_3, window_bounds = array<i64: 1, 8, 2>}]} {
    %c8_i32 = arith.constant 8 : i32
    %0 = arith.muli %arg2, %c8_i32 : i32
    %1 = tpu.assume_multiple %0, 8 : i32
    %c0 = arith.constant 0 : index
    %c0_0 = arith.constant 0 : index
    %2 = arith.index_cast %1 : i32 to index
    %c0_1 = arith.constant 0 : index
    %3 = vector.load %arg3[%c0, %c0_0, %2, %c0_1] : memref<1x4x18x18xbf16, #tpu.memory_space<vmem>>, vector<1x4x10x18xbf16>
    %4 = vector.shape_cast %3 : vector<1x4x10x18xbf16> to vector<4x10x18xbf16>
    %5 = vector.extract_strided_slice %4 {offsets = [0, 0, 0], sizes = [4, 8, 16], strides = [1, 1, 1]} : vector<4x10x18xbf16> to vector<4x8x16xbf16>
    %6 = vector.shape_cast %5 : vector<4x8x16xbf16> to vector<4x128xbf16>
    %7 = vector.extract_strided_slice %4 {offsets = [0, 0, 1], sizes = [4, 8, 16], strides = [1, 1, 1]} : vector<4x10x18xbf16> to vector<4x8x16xbf16>
    %8 = vector.shape_cast %7 : vector<4x8x16xbf16> to vector<4x128xbf16>
    %9 = vector.extract_strided_slice %4 {offsets = [0, 0, 2], sizes = [4, 8, 16], strides = [1, 1, 1]} : vector<4x10x18xbf16> to vector<4x8x16xbf16>
    %10 = vector.shape_cast %9 : vector<4x8x16xbf16> to vector<4x128xbf16>
    %11 = vector.extract_strided_slice %4 {offsets = [0, 1, 0], sizes = [4, 8, 16], strides = [1, 1, 1]} : vector<4x10x18xbf16> to vector<4x8x16xbf16>
    %12 = vector.shape_cast %11 : vector<4x8x16xbf16> to vector<4x128xbf16>
    %13 = vector.extract_strided_slice %4 {offsets = [0, 1, 1], sizes = [4, 8, 16], strides = [1, 1, 1]} : vector<4x10x18xbf16> to vector<4x8x16xbf16>
    %14 = vector.shape_cast %13 : vector<4x8x16xbf16> to vector<4x128xbf16>
    %15 = vector.extract_strided_slice %4 {offsets = [0, 1, 2], sizes = [4, 8, 16], strides = [1, 1, 1]} : vector<4x10x18xbf16> to vector<4x8x16xbf16>
    %16 = vector.shape_cast %15 : vector<4x8x16xbf16> to vector<4x128xbf16>
    %17 = vector.extract_strided_slice %4 {offsets = [0, 2, 0], sizes = [4, 8, 16], strides = [1, 1, 1]} : vector<4x10x18xbf16> to vector<4x8x16xbf16>
    %18 = vector.shape_cast %17 : vector<4x8x16xbf16> to vector<4x128xbf16>
    %19 = vector.extract_strided_slice %4 {offsets = [0, 2, 1], sizes = [4, 8, 16], strides = [1, 1, 1]} : vector<4x10x18xbf16> to vector<4x8x16xbf16>
    %20 = vector.shape_cast %19 : vector<4x8x16xbf16> to vector<4x128xbf16>
    %21 = vector.extract_strided_slice %4 {offsets = [0, 2, 2], sizes = [4, 8, 16], strides = [1, 1, 1]} : vector<4x10x18xbf16> to vector<4x8x16xbf16>
    %22 = vector.shape_cast %21 : vector<4x8x16xbf16> to vector<4x128xbf16>
    %23 = tpu.concatenate %6, %8, %10, %12, %14, %16, %18, %20, %22 in 0 : vector<4x128xbf16>, vector<4x128xbf16>, vector<4x128xbf16>, vector<4x128xbf16>, vector<4x128xbf16>, vector<4x128xbf16>, vector<4x128xbf16>, vector<4x128xbf16>, vector<4x128xbf16> -> vector<36x128xbf16>
    %c0_2 = arith.constant 0 : index
    %c0_3 = arith.constant 0 : index
    %24 = vector.load %arg4[%c0_2, %c0_3] : memref<8x36xbf16, #tpu.memory_space<vmem>>, vector<8x36xbf16>
    %cst = arith.constant dense<0.000000e+00> : vector<8x128xf32>
    %25 = tpu.matmul %24, %23, %cst {dimension_numbers = #tpu.dot_dimension_numbers<[1], [0], [0], [1], [0, 0, 1, 1], [], []>} : vector<8x36xbf16>, vector<36x128xbf16>, vector<8x128xf32> -> vector<8x128xf32>
    %26 = arith.truncf %25 : vector<8x128xf32> to vector<8x128xbf16>
    %c0_4 = arith.constant 0 : index
    %c0_5 = arith.constant 0 : index
    %c0_6 = arith.constant 0 : index
    %27 = vector.load %arg5[%c0_4, %c0_5, %c0_6] : memref<1x8x128xbf16, #tpu.memory_space<vmem>>, vector<1x8x128xbf16>
    %28 = vector.shape_cast %27 : vector<1x8x128xbf16> to vector<8x128xbf16>
    %29 = vector.shape_cast %26 : vector<8x128xbf16> to vector<1x8x128xbf16>
    tpu.vector_store %arg5[%c0_4, %c0_5, %c0_6], %29 {strides = array<i32>} : memref<1x8x128xbf16, #tpu.memory_space<vmem>>, vector<1x8x128xbf16>,
    %cst_7 = arith.constant dense<0.000000e+00> : vector<8xf32>
    %30 = vector.multi_reduction <add>, %25, %cst_7 [1] : vector<8x128xf32> to vector<8xf32>
    %31 = vector.shape_cast %30 : vector<8xf32> to vector<8x1xf32>
    %cst_8 = arith.constant 7.812500e-03 : f32
    %32 = vector.broadcast %cst_8 : f32 to vector<8x1xf32>
    %33 = arith.mulf %31, %32 : vector<8x1xf32>
    %34 = vector.broadcast %33 : vector<8x1xf32> to vector<8x128xf32>
    %35 = arith.subf %25, %34 : vector<8x128xf32>
    %36 = arith.mulf %35, %35 : vector<8x128xf32>
    %cst_9 = arith.constant dense<0.000000e+00> : vector<8xf32>
    %37 = vector.multi_reduction <add>, %36, %cst_9 [1] : vector<8x128xf32> to vector<8xf32>
    %38 = vector.shape_cast %37 : vector<8xf32> to vector<8x1xf32>
    %c0_i32 = arith.constant 0 : i32
    %39 = arith.cmpi eq, %arg2, %c0_i32 : i32
    %40 = arith.extui %39 : i1 to i32
    %c0_i32_10 = arith.constant 0 : i32
    %41 = arith.cmpi ne, %40, %c0_i32_10 : i32
    scf.if %41 {
      %48 = tpu.concatenate %33, %38 in 1 : vector<8x1xf32>, vector<8x1xf32> -> vector<8x2xf32>
      %c0_14 = arith.constant 0 : index
      %c0_15 = arith.constant 0 : index
      %49 = vector.load %arg7[%c0_14, %c0_15] : memref<8x2xf32, #tpu.memory_space<vmem>>, vector<8x2xf32>
      tpu.vector_store %arg7[%c0_14, %c0_15], %48 {strides = array<i32>} : memref<8x2xf32, #tpu.memory_space<vmem>>, vector<8x2xf32>,
    } else {
    }
    %c0_i32_11 = arith.constant 0 : i32
    %42 = arith.cmpi sgt, %arg2, %c0_i32_11 : i32
    %43 = arith.extui %42 : i1 to i32
    %c0_i32_12 = arith.constant 0 : i32
    %44 = arith.cmpi ne, %43, %c0_i32_12 : i32
    scf.if %44 {
      %c0_14 = arith.constant 0 : index
      %c0_15 = arith.constant 0 : index
      %48 = vector.load %arg7[%c0_14, %c0_15] : memref<8x2xf32, #tpu.memory_space<vmem>>, vector<8x1xf32>
      %c0_16 = arith.constant 0 : index
      %c1 = arith.constant 1 : index
      %49 = vector.load %arg7[%c0_16, %c1] : memref<8x2xf32, #tpu.memory_space<vmem>>, vector<8x1xf32>
      %50 = arith.sitofp %arg2 : i32 to f32
      %51 = arith.subf %33, %48 : vector<8x1xf32>
      %cst_17 = arith.constant 1.000000e+00 : f32
      %52 = arith.addf %50, %cst_17 : f32
      %cst_18 = arith.constant 1.000000e+00 : f32
      %53 = arith.divf %cst_18, %52 : f32
      %54 = vector.broadcast %53 : f32 to vector<8x1xf32>
      %55 = arith.mulf %51, %54 : vector<8x1xf32>
      %56 = arith.addf %48, %55 : vector<8x1xf32>
      %57 = arith.addf %49, %38 : vector<8x1xf32>
      %58 = arith.mulf %51, %51 : vector<8x1xf32>
      %cst_19 = arith.constant 1.280000e+02 : f32
      %59 = arith.mulf %cst_19, %50 : f32
      %cst_20 = arith.constant 1.000000e+00 : f32
      %60 = arith.addf %50, %cst_20 : f32
      %61 = arith.divf %59, %60 : f32
      %62 = vector.broadcast %61 : f32 to vector<8x1xf32>
      %63 = arith.mulf %58, %62 : vector<8x1xf32>
      %64 = arith.addf %57, %63 : vector<8x1xf32>
      %65 = tpu.concatenate %56, %64 in 1 : vector<8x1xf32>, vector<8x1xf32> -> vector<8x2xf32>
      %c0_21 = arith.constant 0 : index
      %c0_22 = arith.constant 0 : index
      %66 = vector.load %arg7[%c0_21, %c0_22] : memref<8x2xf32, #tpu.memory_space<vmem>>, vector<8x2xf32>
      tpu.vector_store %arg7[%c0_21, %c0_22], %65 {strides = array<i32>} : memref<8x2xf32, #tpu.memory_space<vmem>>, vector<8x2xf32>,
    } else {
    }
    %c1_i32 = arith.constant 1 : i32
    %45 = arith.cmpi eq, %arg2, %c1_i32 : i32
    %46 = arith.extui %45 : i1 to i32
    %c0_i32_13 = arith.constant 0 : i32
    %47 = arith.cmpi ne, %46, %c0_i32_13 : i32
    scf.if %47 {
      %c0_14 = arith.constant 0 : index
      %c0_15 = arith.constant 0 : index
      %48 = vector.load %arg7[%c0_14, %c0_15] : memref<8x2xf32, #tpu.memory_space<vmem>>, vector<8x1xf32>
      %c0_16 = arith.constant 0 : index
      %c1 = arith.constant 1 : index
      %49 = vector.load %arg7[%c0_16, %c1] : memref<8x2xf32, #tpu.memory_space<vmem>>, vector<8x1xf32>
      %cst_17 = arith.constant 3.906250e-03 : f32
      %50 = vector.broadcast %cst_17 : f32 to vector<8x1xf32>
      %51 = arith.mulf %49, %50 : vector<8x1xf32>
      %cst_18 = arith.constant 0.000000e+00 : f32
      %52 = vector.broadcast %cst_18 : f32 to vector<8x1xf32>
      %53 = arith.maximumf %51, %52 : vector<8x1xf32>
      %cst_19 = arith.constant 9.99999974E-6 : f32
      %54 = vector.broadcast %cst_19 : f32 to vector<8x1xf32>
      %55 = arith.addf %53, %54 : vector<8x1xf32>
      %56 = math.rsqrt %55 : vector<8x1xf32>
      %57 = tpu.concatenate %48, %56 in 1 : vector<8x1xf32>, vector<8x1xf32> -> vector<8x2xf32>
      %c0_20 = arith.constant 0 : index
      %c0_21 = arith.constant 0 : index
      %c0_22 = arith.constant 0 : index
      %58 = vector.load %arg6[%c0_20, %c0_21, %c0_22] : memref<1x8x2xf32, #tpu.memory_space<vmem>>, vector<1x8x2xf32>
      %59 = vector.shape_cast %58 : vector<1x8x2xf32> to vector<8x2xf32>
      %60 = vector.shape_cast %57 : vector<8x2xf32> to vector<1x8x2xf32>
      tpu.vector_store %arg6[%c0_20, %c0_21, %c0_22], %60 {strides = array<i32>} : memref<1x8x2xf32, #tpu.memory_space<vmem>>, vector<1x8x2xf32>,
    } else {
    }
    return
  }
  func.func @transform_0(%arg0: i32, %arg1: i32, %arg2: i32) -> (i32, i32, i32, i32) {
    %c0_i32 = arith.constant 0 : i32
    %c0_i32_0 = arith.constant 0 : i32
    %c0_i32_1 = arith.constant 0 : i32
    %c0_i32_2 = arith.constant 0 : i32
    return %arg0, %c0_i32, %c0_i32_0, %c0_i32_1 : i32, i32, i32, i32
  }
  func.func @transform_1(%arg0: i32, %arg1: i32, %arg2: i32) -> (i32, i32) {
    %c0_i32 = arith.constant 0 : i32
    %c0_i32_0 = arith.constant 0 : i32
    return %arg1, %c0_i32 : i32, i32
  }
  func.func @transform_2(%arg0: i32, %arg1: i32, %arg2: i32) -> (i32, i32, i32) {
    %c0_i32 = arith.constant 0 : i32
    return %arg0, %arg1, %arg2 : i32, i32, i32
  }
  func.func @transform_3(%arg0: i32, %arg1: i32, %arg2: i32) -> (i32, i32, i32) {
    %c0_i32 = arith.constant 0 : i32
    %c0_i32_0 = arith.constant 0 : i32
    return %arg0, %arg1, %c0_i32 : i32, i32, i32
  }
}

</mosaic_0001>

<bundles_post_ra>
// kernel: tpu_custom_call.1
= control target key start
LH: loop header
LB: loop body
LE: loop exit
PB: predicated region body
PF: predicated region fallthrough
CT: control target
= control target key end

     0   :  { %9 = vsyncpa [#allocation4], 0  ;;  %s2928_s0 = inlined_call_operand.vmem [shape: bf16[2,4,18,18], index: 0, kind: input, shape index: {}]   ;;  %s2929_s1 = inlined_call_operand.vmem [shape: bf16[8,36], index: 1, kind: input, shape index: {}]   ;;  %s2930_s2 = inlined_call_operand.hbm [shape: bf16[2,8,256], index: 2, kind: output, shape index: {0}]   ;;  %s2931_s3 = inlined_call_operand.vmem [shape: f32[2,8,2], index: 3, kind: output, shape index: {1}]  }
   0x1   :  { %11 = vsyncpa [#allocation4 + $0x1], 0  ;;  %s2194_s12 = smov 0   ;;  %s2196_s13 = smov 0  }
   0x2   :  { %s2198_s14 = smov 0   ;;  %s2200_s15 = smov 0  }
   0x3   :  { %s2202_s16 = smov 0   ;;  %s2204_s17 = smov 0  }
   0x4   :  { %s2206_s18 = smov 0   ;;  %s2208_s19 = smov 0  }
   0x5 LB: > { %s1836_s20 = sadd.s32 4294967295, %s2157_s19   ;;  %s1837_s21 = sadd.s32 4294967294, %s2157_s19   ;;  %s2157_s19 = sphi %s2208_s19, %s17_s19   ;;  %s2153_s18 = sphi %s2206_s18, %s2944_s18   ;;  %s2149_s17 = sphi %s2204_s17, %s2943_s17   ;;  %s2145_s16 = sphi %s2202_s16, %s2942_s16   ;;  %s2141_s15 = sphi %s2200_s15, %s2941_s15   ;;  %s2137_s14 = sphi %s2198_s14, %s2940_s14   ;;  %s2133_s13 = sphi %s2196_s13, %s2939_s13   ;;  %s2129_s12 = sphi %s2194_s12, %s2938_s12  }
   0x6   : > { %s29_s22 = sadd.s32 1, %s2149_s17  ;;  %s36_s23 = sadd.s32 1, %s2153_s18 }
   0x7   : > { %p30_p0 = scmp.ge.s32.totalorder %s29_s22, 2  ;;  %p109_p1 = scmp.ne.s32.totalorder %s2137_s14, %s2133_s13 }
   0x8   : > { %p110_p2 = scmp.eq.s32.totalorder %s1836_s20, 3  ;;  %p115_p5 = scmp.ne.s32.totalorder %s2133_s13, %s2129_s12 }
   0x9   : > { %s2946_s22 = smov (%p30_p0, %s29_s22), 0  ;;  %s2948_s23 = smov (!%p30_p0, %s36_s23), %s2153_s18 }
   0xa   : > { %s95_s24 = ssub.s32 %s2149_s17, %s2946_s22  ;;  %p2245_p3 = por %p110_p2, %p109_p1 }
   0xb   : > { %p38_p4 = scmp.ge.s32.totalorder %s2948_s23, 2  ;;  %p116_p6 = scmp.eq.s32.totalorder %s1837_s21, 3 }
   0xc   : > { %p1841_p7 = scmp.ge.s32.totalorder %s2157_s19, 1  ;;  %p177_p9 = scmp.lt.s32.totalorder %s2157_s19, 5 }
   0xd   : > { %s2950_s23 = smov (%p38_p4, %s2948_s23), 0  ;;  %p2254_p8 = por %p116_p6, %p115_p5 }
   0xe   : > { %s92_s27 = ssub.s32 %s2153_s18, %s2950_s23  ;;  %s99_s28 = sadd.s32 1, %s2137_s14 }
   0xf   : > { %s96_s29 = sor.u32 %s95_s24, %s92_s27  ;;  %p178_p10 = pnand %p1841_p7, %p177_p9 }
  0x10   : > { %p97_p11 = scmp.eq.s32.totalorder %s96_s29, 0  ;;  %p212_p12 = scmp.lt.s32.totalorder (!%p178_p10), %s2145_s16, 1 }
  0x11   : > { %181 = sbr.rel (%p178_p10) target bundleno = 1150 (0x47e), region = 28  ;;  %s1845_s4 = sshll.u32 (!%p178_p10), %s2141_s15, 3 }
  0x12   : > { %s2263_s30 = scalar_select %p97_p11, %s2137_s14, %s99_s28  }
  0x13   : > { %s230_s5 = sshra.s32 (!%p178_p10), %s1845_s4, 3  ;;  %s2159_s29 = smov (!%p178_p10), 126  }
  0x14   : > { %s1846_s7 = sshll.u32 (!%p178_p10), %s230_s5, 2  ;;  %s2160_s4 = smov (!%p178_p10), 127  }
  0x15   : > { %s2163_s5 = smov (!%p178_p10), 16   ;;  %s2168_s10 = smov (!%p178_p10), 96  }
  0x16   : > { %s213_s6 = scalar_select %p212_p12, %s2145_s16, 1  ;;  %vm1120_vm0 = vcmask 1042432   ;;  %vm1121_vm1 = vcmask 1046532   ;;  %vm659_vm3 = vsmask.f32 3328  ;;  %v258_v60 = vlaneseq }
  0x17   : > { %vm2276_vm2 = vmor %vm1120_vm0, %vm1121_vm1  ;;  %vm660_vm4 = vsmask.f32 7440  ;;  %v2161_v58 = vmov 1983009808   ;;  %s2169_s11 = smov 112   ;;  %vm357_vm6 = vcmask 130048  }
  0x18   : > { %s1973_s8 = smul.u32 48, %s213_s6  ;;  %s1844_s9 = sshll.u32 %s213_s6, 3  ;;  %vm2326_vm5 = vmor %vm659_vm3, %vm660_vm4  ;;  %v256_v59 = vunpack.c.l.s4 %v2161_v58  ;;  %v259_v62 = vshrl.u32 %v258_v60, 7  ;;  %vm361_vm7 = vcmask 261120   ;;  %vm364_vm8 = vcmask 392192  }
  0x19   : > { %s2271_s20 = scalar_lea.vmem %s2931_s3, %s1844_s9  ;;  %s2164_s6 = smov 48   ;;  %vm367_vm9 = vcmask 523264   ;;  %vm370_vm10 = vcmask 654336   ;;  %vm373_vm11 = vcmask 785408   ;;  %vm376_vm12 = vcmask 916480  }
  0x1a   : > { %s216_s27 = scalar_lea.vmem %s2928_s0, %s1973_s8  ;;  %v257_v61 = vunpack.c.0.s8 %v256_v59  ;;  %s2166_s8 = smov 64   ;;  %vm2171_vm13 = vmmov 0   ;;  %vm1557_vm14 = vcmask 1041408   ;;  %vm1560_vm15 = vcmask 1043456  }
  0x1b   : > { %s233_s28 = scalar_lea.vmem %s216_s27, %s1846_s7  ;;  %s2165_s7 = smov 32   ;;  %vm1563_vm0 = vcmask 1045504   ;;  %vm1575_vm1 = vcmask 293888  }
  0x1c   : > { %v2280_v1 = vld [vmem:[%s233_s28 + $0xc] sm:$0xf]  ;;  %v237_v2 = vld [vmem:[%s233_s28 + $0x10] sm:$0x1]  ;;  %v2282_v3 = vld [vmem:[%s233_s28] sm:$0xf] }
  0x1d   : > { %v1890_v4 = vrot.slane %v2280_v1, 9  ;;  %v1129_v5 = vrot.slane %v237_v2, 5  ;;  %v235_v6 = vld [vmem:[%s233_s28 + $0x4] sm:$0x1]  ;;  %v1889_v7 = vrot.slane %v2282_v3, 9  ;;  %v245_v19 = vshrl.u32 %v2282_v3, 16 }
  0x1e   : > { %v1125_v8 = vrot.slane %v235_v6, 5  ;;  %v2286_v9 = vld [vmem:[%s233_s28 + $0x24] sm:$0xf]  ;;  %v241_v10 = vld [vmem:[%s233_s28 + $0x28] sm:$0x1]  ;;  %v664_v22 = vshll.u32 %v2282_v3, 16 }
  0x1f   : > { %v2290_v11 = vsel %vm2276_vm2, %v1890_v4, %v1129_v5  ;;  %v1892_v12 = vrot.slane %v2286_v9, 9  ;;  %v1137_v13 = vrot.slane %v241_v10, 5  ;;  %v2293_v14 = vld [vmem:[%s233_s28 + $0x18] sm:$0xf]  ;;  %v239_v15 = vld [vmem:[%s233_s28 + $0x1c] sm:$0x1]  ;;  %v2378_v5 = vsub.s32 %v257_v61, %v259_v62 }
  0x20   : > { %1409 = vrot.lane.b32.xlu1 %v2290_v11, %s2159_s29  ;;  %v2299_v16 = vsel %vm2276_vm2, %v1889_v7, %v1125_v8  ;;  %v1891_v17 = vrot.slane %v2293_v14, 9  ;;  %v1133_v18 = vrot.slane %v239_v15, 5  ;;  %v251_v21 = vshrl.u32 %v2293_v14, 16  ;;  %s2167_s9 = smov 80   ;;  %s200_s27 = sand.u32 1, %s2133_s13  }
  0x21   : > { %1407 = vrot.lane.b32.xlu0 %v2299_v16, %s2159_s29  ;;  %v2307_v20 = vsel %vm2276_vm2, %v1892_v12, %v1137_v13  ;;  %v688_v24 = vshll.u32 %v2293_v14, 16  ;;  %v694_v25 = vshll.u32 %v239_v15, 16  ;;  %v663_v28 = vrot.slane %v245_v19, 4  ;;  %s2869_s28 = sshll.u32 %s200_s27, 2  ;;  %p1915_p13 = scmp.ne.s32.totalorder %s2141_s15, 0 }
  0x22   : > { %v2313_v23 = vsel %vm2276_vm2, %v1891_v17, %v1133_v18  ;;  %v687_v26 = vrot.slane %v251_v21, 4  ;;  %v666_v30 = vrot.slane %v664_v22, 5  ;;  %v670_v31 = vshll.u32 %v235_v6, 16 }
  0x23   : > { %v690_v27 = vrot.slane %v688_v24, 5  ;;  %v696_v29 = vrot.slane %v694_v25, 5  ;;  %v252_v33 = vshrl.u32 %v2286_v9, 16  ;;  %v700_v34 = vshll.u32 %v2286_v9, 16 }
  0x24   : > { %1413 = vrot.lane.b32.xlu1 %v2307_v20, %s2159_s29  ;;  %v706_v35 = vshll.u32 %v241_v10, 16  ;;  %v667_v37 = vor.u32 %v666_v30, %v663_v28  ;;  %v672_v38 = vrot.slane %v670_v31, 5  ;;  %v246_v39 = vshrl.u32 %v2280_v1, 16 }
  0x25   : > { %1411 = vrot.lane.b32.xlu0 %v2313_v23, %s2159_s29  ;;  %v691_v32 = vor.u32 %v690_v27, %v687_v26  ;;  %v676_v40 = vshll.u32 %v2280_v1, 16  ;;  %v699_v42 = vrot.slane %v252_v33, 4  ;;  %v702_v43 = vrot.slane %v700_v34, 5 }
  0x26   : > { %v668_v44 = vrot.slane %v667_v37, 4  ;;  %v675_v45 = vrot.slane %v246_v39, 4  ;;  %v682_v47 = vshll.u32 %v237_v2, 16  ;;  %v708_v50 = vrot.slane %v706_v35, 5 }
  0x27   : > { %v692_v41 = vrot.slane %v691_v32, 4  ;;  %v678_v46 = vrot.slane %v676_v40, 5  ;;  %v703_v49 = vor.u32 %v702_v43, %v699_v42  ;;  %v1143_v63 = vshrl.u32 %v2290_v11, 16 }
  0x28   : > { %v2344_v51 = vsel %vm2326_vm5, %v668_v44, %v672_v38  ;;  %v684_v53 = vrot.slane %v682_v47, 5  ;;  %v1142_v0 = vshrl.u32 %v2299_v16, 16  ;;  %v1149_v2 = vshrl.u32 %v2307_v20, 16 }
  0x29   : > { %v2338_v48 = vsel %vm2326_vm5, %v692_v41, %v696_v29  ;;  %v679_v52 = vor.u32 %v678_v46, %v675_v45  ;;  %978 = vrot.lane.b32.xlu0 %v2344_v51, %s2159_s29  ;;  %v704_v54 = vrot.slane %v703_v49, 4  ;;  %v1148_v4 = vshrl.u32 %v2313_v23, 16 }
  0x2a   : > { %982 = vrot.lane.b32.xlu1 %v2338_v48, %s2159_s29  ;;  %v1144_v6 = vpack.i.b16 %v1143_v63, %v1142_v0  ;;  %v2162_v8 = vmov 1934713408   ;;  %v1141_v12 = vpack.i.b16 %v2290_v11, %v2299_v16  ;;  %v1147_v13 = vpack.i.b16 %v2307_v20, %v2313_v23 }
  0x2b   : > { %v680_v55 = vrot.slane %v679_v52, 4  ;;  %v2350_v56 = vsel %vm2326_vm5, %v704_v54, %v708_v50  ;;  %v1150_v7 = vpack.i.b16 %v1149_v2, %v1148_v4  ;;  %v273_v10 = vunpack.c.l.s4 %v2162_v8 }
  0x2c   : > { %v1192_v17 = vrot.slane %v1144_v6, %v2378_v5  ;;  %v1158_v22 = vrot.slane %v1141_v12, %v2378_v5  ;;  %v1166_v24 = vrot.slane %v1147_v13, %v2378_v5  ;;  %v247_v27 = vpack.i.b16 %v246_v39, %v245_v19 }
  0x2d   : > { %v2356_v57 = vsel %vm2326_vm5, %v680_v55, %v684_v53  ;;  %v274_v15 = vunpack.c.0.s8 %v273_v10  ;;  %v1200_v18 = vrot.slane %v1150_v7, %v2378_v5  ;;  %v253_v28 = vpack.i.b16 %v252_v33, %v251_v21 }
  0x2e   : > { %984 = vrot.lane.b32.xlu1 %v2350_v56, %s2159_s29  ;;  %980 = vrot.lane.b32.xlu0 %v2356_v57, %s2159_s29  ;;  %v1168_v29 = vcombine.high %v1158_v22, %v1166_v24  ;;  %v1167_v30 = vcombine.low %v1158_v22, %v1166_v24  ;;  %v2418_v35 = vrot.slane %v247_v27, %v2378_v5 }
  0x2f   : > { %v2402_v25 = vsub.s32 %v274_v15, %v259_v62  ;;  %v1201_v26 = vcombine.low %v1192_v17, %v1200_v18  ;;  %v2421_v19 = vrot.slane %v253_v28, %v2378_v5  ;;  %v1202_v37 = vcombine.high %v1192_v17, %v1200_v18 }
  0x30   : > { %v244_v40 = vpack.i.b16 %v2280_v1, %v2282_v3  ;;  %v250_v41 = vpack.i.b16 %v2286_v9, %v2293_v14  ;;  %v718_v42 = vpack.i.b16 %v2350_v56, %v2338_v48  ;;  %v712_v43 = vpack.i.b16 %v2356_v57, %v2344_v51 }
  0x31   : > { %v1209_v34 = vrot.slane %v1201_v26, %v2402_v25  ;;  %v1182_v21 = vrot.slane %v1168_v29, %v2402_v25  ;;  %v2425_v36 = vrot.slane %v1167_v30, %v2402_v25  ;;  %v304_v45 = vcombine.low %v2418_v35, %v2421_v19 }
  0x32   : > { %842 = vrot.lane.b32.xlu1 %v2356_v57, %s2160_s4  ;;  %840 = vrot.lane.b32.xlu0 %v2344_v51, %s2160_s4  ;;  %v1216_v46 = vrot.slane %v1202_v37, %v2402_v25  ;;  %v2460_v47 = vrot.slane %v718_v42, %v2378_v5 }
  0x33   : > { %v1893_v33 = vcombine.low %v1209_v34, %v1209_v34  ;;  %v1948_v44 = vcombine.high %v1209_v34, %v1209_v34  ;;  %v1896_v49 = vcombine.low %v1182_v21, %v1182_v21  ;;  %v312_v50 = vrot.slane %v304_v45, %v2402_v25 }
  0x34   : > { %v1949_v58 = vcombine.high %v1182_v21, %v1182_v21  ;;  %v1950_v63 = vcombine.high %v1216_v46, %v1216_v46 }
  0x35   : > { %v1847_v54 = vcombine.low %v312_v50, %v312_v50  ;;  %v1924_v0 = vcombine.high %v312_v50, %v312_v50 }
  0x36   : > { %846 = vrot.lane.b32.xlu1 %v2350_v56, %s2160_s4  ;;  %844 = vrot.lane.b32.xlu0 %v2338_v48, %s2160_s4 }
  0x3a   : > { %1271 = vrot.lane.b32.xlu1 %v2290_v11, %s2160_s4  ;;  %1269 = vrot.lane.b32.xlu0 %v2299_v16, %s2160_s4  ;;  %v719_v11 = vshrl.u32 %v2338_v48, 16  ;;  %v713_v16 = vshrl.u32 %v2344_v51, 16  ;;  %v2463_v48 = vrot.slane %v712_v43, %v2378_v5  ;;  %v1897_v51 = vcombine.low %v1216_v46, %v1216_v46 }
  0x3c   : > { %v738_v55 = vcombine.low %v2463_v48, %v2460_v47 }
  0x3e   : > { %1275 = vrot.lane.b32.xlu1 %v2307_v20, %s2160_s4  ;;  %1273 = vrot.lane.b32.xlu0 %v2313_v23, %s2160_s4  ;;  %v720_v20 = vshrl.u32 %v2350_v56, 16  ;;  %v714_v23 = vshrl.u32 %v2356_v57, 16  ;;  %v2480_v59 = vrot.slane %v738_v55, %v2402_v25 }
  0x40   : > { %v721_v31 = vpack.i.b16 %v720_v20, %v719_v11  ;;  %v715_v32 = vpack.i.b16 %v714_v23, %v713_v16  ;;  %v1935_v61 = vcombine.high %v2480_v59, %v2480_v59 }
  0x42   : > { %385 = vrot.lane.b32.xlu1 %v2280_v1, %s2160_s4  ;;  %383 = vrot.lane.b32.xlu0 %v2282_v3, %s2160_s4  ;;  %v2430_v38 = vrot.slane %v715_v32, %v2378_v5  ;;  %v2433_v39 = vrot.slane %v721_v31, %v2378_v5 }
  0x46   : > { %389 = vrot.lane.b32.xlu1 %v2286_v9, %s2160_s4  ;;  %387 = vrot.lane.b32.xlu0 %v2293_v14, %s2160_s4 }
  0x4a   : > { %523 = vrot.lane.b32.xlu1 %v2280_v1, %s2159_s29  ;;  %521 = vrot.lane.b32.xlu0 %v2282_v3, %s2159_s29  ;;  %v1947_v1 = vcombine.high %v2425_v36, %v2425_v36  ;;  %v772_v3 = vcombine.low %v2430_v38, %v2433_v39 }
  0x4c   : > { %v780_v52 = vrot.slane %v772_v3, %v2402_v25 }
  0x4e   : > { %527 = vrot.lane.b32.xlu1 %v2286_v9, %s2159_s29  ;;  %525 = vrot.lane.b32.xlu0 %v2293_v14, %s2159_s29  ;;  %v2454_v9 = vrot.slane %v244_v40, %v2378_v5  ;;  %v2457_v14 = vrot.slane %v250_v41, %v2378_v5  ;;  %v1868_v56 = vcombine.low %v780_v52, %v780_v52  ;;  %s202_s29 = scalar_lea.vmem [#allocation3], %s2869_s28 }
  0x4f   : > { %v1936_v62 = vcombine.high %v780_v52, %v780_v52 }
  0x50   : > { %v270_v53 = vcombine.low %v2454_v9, %v2457_v14 }
  0x52   : > { %1222 = vrot.lane.b32.xlu1 %v1893_v33, %s2163_s5  ;;  %1232 = vrot.lane.b32.xlu0 %v1948_v44, %s2164_s6  ;;  %v2476_v57 = vrot.slane %v270_v53, %v2402_v25 }
  0x54   : > { %v1923_v60 = vcombine.high %v2476_v57, %v2476_v57 }
  0x56   : > { %1227 = vrot.lane.b32.xlu1 %v1947_v1, %s2165_s7  ;;  %1237 = vrot.lane.b32.xlu0 %v1896_v49, %s2166_s8 }
  0x5a   : > { %1242 = vrot.lane.b32.xlu1 %v1897_v51, %s2167_s9  ;;  %325 = vrot.lane.b32.xlu0 %v1847_v54, %s2163_s5 }
  0x5e   : > { %793 = vrot.lane.b32.xlu1 %v1868_v56, %s2163_s5  ;;  %1247 = vrot.lane.b32.xlu0 %v1949_v58, %s2168_s10 }
  0x62   : > { %330 = vrot.lane.b32.xlu1 %v1923_v60, %s2165_s7  ;;  %798 = vrot.lane.b32.xlu0 %v1935_v61, %s2165_s7 }
  0x66   : > { %803 = vrot.lane.b32.xlu1 %v1936_v62, %s2164_s6  ;;  %1252 = vrot.lane.b32.xlu0 %v1950_v63, %s2169_s11 }
  0x6a   : > { %335 = vrot.lane.b32.xlu0 %v1924_v0, %s2164_s6 }
  0x92   : > { %v2493_v2 = vpop.permute.xlu1 %1409 }
  0x93   : > { %v1419_v4 = vshrl.u32 %v2493_v2, 16  ;;  %v2496_v6 = vpop.permute.xlu0 %1407 }
  0x94   : > { %v1418_v7 = vshrl.u32 %v2496_v6, 16 }
  0x96   : > { %v2499_v8 = vpack.i.b16 %v1419_v4, %v1418_v7  ;;  %v2501_v10 = vpop.permute.xlu1 %1413 }
  0x97   : > { %v2503_v12 = vpop.permute.xlu0 %1411 }
  0x9b   : > { %v979_v15 = vpop.permute.xlu0 %978 }
  0x9c   : > { %v983_v13 = vpop.permute.xlu1 %982  ;;  %v989_v16 = vshrl.u32 %v979_v15, 16 }
  0x9d   : > { %v995_v18 = vshrl.u32 %v983_v13, 16 }
  0xa0   : > { %v985_v17 = vpop.permute.xlu1 %984  ;;  %v981_v11 = vpop.permute.xlu0 %980 }
  0xa1   : > { %v994_v22 = vpack.i.b16 %v985_v17, %v983_v13  ;;  %v996_v24 = vshrl.u32 %v985_v17, 16  ;;  %v988_v20 = vpack.i.b16 %v981_v11, %v979_v15  ;;  %v990_v23 = vshrl.u32 %v981_v11, 16 }
  0xa3   : > { %v997_v26 = vpack.i.b16 %v996_v24, %v995_v18  ;;  %v2506_v27 = vrot.slane %v994_v22, %v2378_v5  ;;  %v991_v28 = vpack.i.b16 %v990_v23, %v989_v16  ;;  %v2509_v29 = vrot.slane %v988_v20, %v2378_v5 }
  0xa4   : > { %v843_v30 = vpop.permute.xlu1 %842  ;;  %v841_v34 = vpop.permute.xlu0 %840 }
  0xa5   : > { %v2512_v31 = vrot.slane %v997_v26, %v2378_v5  ;;  %v852_v32 = vshrl.u32 %v843_v30, 16  ;;  %v1014_v21 = vcombine.low %v2509_v29, %v2506_v27  ;;  %v1015_v33 = vcombine.high %v2509_v29, %v2506_v27 }
  0xa6   : > { %v2519_v37 = vrot.slane %v991_v28, %v2378_v5  ;;  %v850_v40 = vpack.i.b16 %v843_v30, %v841_v34  ;;  %v851_v41 = vshrl.u32 %v841_v34, 16 }
  0xa8   : > { %v1048_v42 = vcombine.low %v2519_v37, %v2512_v31  ;;  %v1049_v43 = vcombine.high %v2519_v37, %v2512_v31  ;;  %v847_v44 = vpop.permute.xlu1 %846  ;;  %v853_v45 = vpack.i.b16 %v852_v32, %v851_v41  ;;  %v845_v1 = vpop.permute.xlu0 %844  ;;  %v2526_v50 = vrot.slane %v850_v40, %v2378_v5 }
  0xa9   : > { %v858_v46 = vshrl.u32 %v847_v44, 16  ;;  %v856_v3 = vpack.i.b16 %v847_v44, %v845_v1  ;;  %v857_v49 = vshrl.u32 %v845_v1, 16  ;;  %v739_v31 = vcombine.high %v2463_v48, %v2460_v47 }
  0xaa   : > { %v2536_v55 = vrot.slane %v853_v45, %v2378_v5  ;;  %v1056_v29 = vrot.slane %v1048_v42, %v2402_v25  ;;  %v1063_v42 = vrot.slane %v1049_v43, %v2402_v25  ;;  %v305_v48 = vcombine.high %v2418_v35, %v2421_v19 }
  0xab   : > { %v859_v51 = vpack.i.b16 %v858_v46, %v857_v49  ;;  %v2529_v52 = vrot.slane %v856_v3, %v2378_v5 }
  0xac   : > { %v2531_v53 = vpop.permute.xlu1 %1271  ;;  %v2533_v54 = vpop.permute.xlu0 %1269  ;;  %v1946_v43 = vcombine.high %v1063_v42, %v1063_v42 }
  0xad   : > { %v876_v56 = vcombine.low %v2526_v50, %v2529_v52  ;;  %v877_v58 = vcombine.high %v2526_v50, %v2529_v52  ;;  %v2543_v60 = vrot.slane %v859_v51, %v2378_v5  ;;  %v1944_v52 = vcombine.high %v1056_v29, %v1056_v29 }
  0xaf   : > { %v910_v61 = vcombine.low %v2536_v55, %v2543_v60  ;;  %v911_v62 = vcombine.high %v2536_v55, %v2543_v60  ;;  %v753_v55 = vrot.slane %v739_v31, %v2402_v25 }
  0xb0   : > { %v2549_v63 = vpop.permute.xlu1 %1275  ;;  %v2551_v0 = vpop.permute.xlu0 %1273 }
  0xb1   : > { %v918_v50 = vrot.slane %v910_v61, %v2402_v25  ;;  %v925_v61 = vrot.slane %v911_v62, %v2402_v25  ;;  %v1871_v47 = vcombine.low %v753_v55, %v753_v55  ;;  %v773_v62 = vcombine.high %v2430_v38, %v2433_v39 }
  0xb3   : > { %v1879_v37 = vcombine.low %v925_v61, %v925_v61  ;;  %v1942_v60 = vcombine.high %v925_v61, %v925_v61 }
  0xb4   : > { %v386_v4 = vpop.permute.xlu1 %385  ;;  %v384_v7 = vpop.permute.xlu0 %383 }
  0xb5   : > { %v395_v13 = vshrl.u32 %v386_v4, 16  ;;  %v394_v15 = vshrl.u32 %v384_v7, 16  ;;  %v393_v17 = vpack.i.b16 %v386_v4, %v384_v7 }
  0xb7   : > { %v396_v11 = vpack.i.b16 %v395_v13, %v394_v15  ;;  %v410_v23 = vrot.slane %v393_v17, %v2378_v5 }
  0xb8   : > { %v390_v18 = vpop.permute.xlu1 %389  ;;  %v388_v24 = vpop.permute.xlu0 %387 }
  0xb9   : > { %v401_v22 = vshrl.u32 %v390_v18, 16  ;;  %v399_v16 = vpack.i.b16 %v390_v18, %v388_v24  ;;  %v400_v20 = vshrl.u32 %v388_v24, 16  ;;  %v2556_v40 = vrot.slane %v396_v11, %v2378_v5 }
  0xbb   : > { %v402_v26 = vpack.i.b16 %v401_v22, %v400_v20  ;;  %v418_v28 = vrot.slane %v399_v16, %v2378_v5  ;;  %v1285_v20 = vpack.i.b16 %v2549_v63, %v2551_v0 }
  0xbc   : > { %v524_v30 = vpop.permute.xlu1 %523  ;;  %v522_v34 = vpop.permute.xlu0 %521 }
  0xbd   : > { %v533_v32 = vshrl.u32 %v524_v30, 16  ;;  %v419_v41 = vcombine.low %v410_v23, %v418_v28  ;;  %v2559_v44 = vrot.slane %v402_v26, %v2378_v5  ;;  %v532_v45 = vshrl.u32 %v522_v34, 16 }
  0xbe   : > { %v531_v1 = vpack.i.b16 %v524_v30, %v522_v34  ;;  %v420_v26 = vcombine.high %v410_v23, %v418_v28  ;;  %v1279_v23 = vpack.i.b16 %v2531_v53, %v2533_v54 }
  0xbf   : > { %v453_v46 = vcombine.low %v2556_v40, %v2559_v44  ;;  %v2564_v49 = vrot.slane %v419_v41, %v2402_v25  ;;  %v534_v51 = vpack.i.b16 %v533_v32, %v532_v45 }
  0xc0   : > { %v528_v3 = vpop.permute.xlu1 %527  ;;  %v526_v7 = vpop.permute.xlu0 %525  ;;  %v548_v22 = vrot.slane %v531_v1, %v2378_v5  ;;  %v1417_v1 = vpack.i.b16 %v2493_v2, %v2496_v6  ;;  %v2597_v2 = vrot.slane %v1285_v20, %v2378_v5  ;;  %v454_v6 = vcombine.high %v2556_v40, %v2559_v44 }
  0xc1   : > { %v539_v4 = vshrl.u32 %v528_v3, 16  ;;  %v537_v13 = vpack.i.b16 %v528_v3, %v526_v7  ;;  %v538_v15 = vshrl.u32 %v526_v7, 16  ;;  %v1927_v17 = vcombine.high %v2564_v49, %v2564_v49 }
  0xc2   : > { %v461_v18 = vrot.slane %v453_v46, %v2402_v25  ;;  %v2575_v30 = vrot.slane %v534_v51, %v2378_v5  ;;  %v1423_v3 = vpack.i.b16 %v2501_v10, %v2503_v12  ;;  %v2602_v7 = vrot.slane %v420_v26, %v2402_v25 }
  0xc3   : > { %v540_v24 = vpack.i.b16 %v539_v4, %v538_v15  ;;  %v556_v11 = vrot.slane %v537_v13, %v2378_v5  ;;  %479 = vrot.lane.b32.xlu1 %v1927_v17, %s2165_s7  ;;  %v1425_v40 = vshrl.u32 %v2501_v10, 16  ;;  %v1424_v44 = vshrl.u32 %v2503_v12, 16 }
  0xc4   : > { %v1223_v16 = vpop.permute.xlu1 %1222  ;;  %v1233_v32 = vpop.permute.xlu0 %1232  ;;  %v1854_v45 = vcombine.low %v461_v18, %v461_v18  ;;  %v1442_v26 = vrot.slane %v1423_v3, %v2378_v5  ;;  %v2624_v3 = vrot.slane %v454_v6, %v2402_v25 }
  0xc5   : > { %v557_v34 = vcombine.low %v548_v22, %v556_v11  ;;  %v2578_v41 = vrot.slane %v540_v24, %v2378_v5  ;;  %v1256_v46 = vsel %vm357_vm6, %v2425_v36, %v1223_v16  ;;  %v558_v17 = vcombine.high %v548_v22, %v556_v11 }
  0xc6   : > { %v1928_v16 = vcombine.high %v461_v18, %v461_v18  ;;  %v1434_v18 = vrot.slane %v1417_v1, %v2378_v5  ;;  %v1930_v35 = vcombine.high %v2624_v3, %v2624_v3 }
  0xc7   : > { %v591_v28 = vcombine.low %v2575_v30, %v2578_v41  ;;  %v592_v51 = vcombine.high %v2575_v30, %v2578_v41  ;;  %474 = vrot.lane.b32.xlu1 %v1854_v45, %s2163_s5  ;;  %v2594_v36 = vrot.slane %v557_v34, %v2402_v25  ;;  %v1296_v45 = vrot.slane %v1279_v23, %v2378_v5 }
  0xc8   : > { %v1228_v4 = vpop.permute.xlu1 %1227  ;;  %v1238_v13 = vpop.permute.xlu0 %1237  ;;  %v2621_v12 = vrot.slane %v558_v17, %v2402_v25  ;;  %v1443_v1 = vcombine.low %v1434_v18, %v1442_v26 }
  0xc9   : > { %v1258_v15 = vsel %vm361_vm7, %v1256_v46, %v1228_v4  ;;  %v1931_v24 = vcombine.high %v2594_v36, %v2594_v36  ;;  %v599_v34 = vrot.slane %v591_v28, %v2402_v25  ;;  %v1305_v11 = vcombine.low %v1296_v45, %v2597_v2 }
  0xca   : > { %v1260_v20 = vsel %vm364_vm8, %v1258_v15, %v1233_v32  ;;  %v1857_v46 = vcombine.low %v2602_v7, %v2602_v7  ;;  %v1426_v4 = vpack.i.b16 %v1425_v40, %v1424_v44  ;;  %v1858_v40 = vcombine.low %v2624_v3, %v2624_v3 }
  0xcb   : > { %617 = vrot.lane.b32.xlu0 %v1931_v24, %s2165_s7  ;;  %484 = vrot.lane.b32.xlu1 %v1928_v16, %s2164_s6  ;;  %v1262_v23 = vsel %vm367_vm9, %v1260_v20, %v1238_v13  ;;  %v1932_v10 = vcombine.high %v599_v34, %v599_v34  ;;  %v1444_v24 = vcombine.high %v1434_v18, %v1442_v26  ;;  %v1287_v13 = vshrl.u32 %v2549_v63, 16 }
  0xcc   : > { %v1243_v22 = vpop.permute.xlu1 %1242  ;;  %v326_v32 = vpop.permute.xlu0 %325  ;;  %v1286_v16 = vshrl.u32 %v2551_v0, 16  ;;  %v2632_v17 = vrot.slane %v1305_v11, %v2402_v25  ;;  %v1864_v20 = vcombine.low %v2621_v12, %v2621_v12  ;;  %v1476_v0 = vrot.slane %v1426_v4, %v2378_v5 }
  0xcd   : > { %v1264_v28 = vsel %vm370_vm10, %v1262_v23, %v1243_v22  ;;  %v360_v44 = vsel %vm357_vm6, %v2476_v57, %v326_v32  ;;  %v1281_v26 = vshrl.u32 %v2531_v53, 16  ;;  %v1280_v18 = vshrl.u32 %v2533_v54, 16 }
  0xce   : > { %v2649_v23 = vrot.slane %v1443_v1, %v2402_v25  ;;  %v1458_v57 = vrot.slane %v1444_v24, %v2402_v25  ;;  %v1861_v53 = vcombine.low %v599_v34, %v599_v34  ;;  %v1951_v54 = vcombine.high %v2632_v17, %v2632_v17 }
  0xcf   : > { %489 = vrot.lane.b32.xlu0 %v1857_v46, %s2166_s8  ;;  %622 = vrot.lane.b32.xlu1 %v1932_v10, %s2164_s6  ;;  %v1288_v46 = vpack.i.b16 %v1287_v13, %v1286_v16  ;;  %v1306_v10 = vcombine.high %v1296_v45, %v2597_v2  ;;  %v1468_v4 = vrot.slane %v2499_v8, %v2378_v5 }
  0xd0   : > { %v794_v15 = vpop.permute.xlu1 %793  ;;  %v1248_v6 = vpop.permute.xlu0 %1247  ;;  %v1282_v1 = vpack.i.b16 %v1281_v26, %v1280_v18  ;;  %v1955_v2 = vcombine.high %v2649_v23, %v2649_v23  ;;  %v1957_v24 = vcombine.high %v1458_v57, %v1458_v57  ;;  %v1933_v39 = vcombine.high %v2621_v12, %v2621_v12 }
  0xd1   : > { %v1266_v22 = vsel %vm373_vm11, %v1264_v28, %v1248_v6  ;;  %v827_v63 = vsel %vm357_vm6, %v2480_v59, %v794_v15  ;;  %v1477_v15 = vcombine.low %v1468_v4, %v1476_v0  ;;  %v1338_v45 = vrot.slane %v1288_v46, %v2378_v5 }
  0xd2   : > { %v1320_v13 = vrot.slane %v1306_v10, %v2402_v25  ;;  %v1330_v8 = vrot.slane %v1282_v1, %v2378_v5  ;;  %v2170_v5 = vmov 0.0   ;;  %v2692_v1 = vrot.slane %v1014_v21, %v2402_v25 }
  0xd3   : > { %627 = vrot.lane.b32.xlu0 %v1864_v20, %s2166_s8  ;;  %494 = vrot.lane.b32.xlu1 %v1858_v40, %s2167_s9  ;;  %v1910_v20 = vcombine.low %v1458_v57, %v1458_v57  ;;  %v1029_v21 = vrot.slane %v1015_v33, %v2402_v25  ;;  %v1882_v33 = vcombine.low %v1056_v29, %v1056_v29 }
  0xd4   : > { %v331_v11 = vpop.permute.xlu1 %330  ;;  %v799_v32 = vpop.permute.xlu0 %798  ;;  %v1339_v6 = vcombine.low %v1330_v8, %v1338_v45  ;;  %v1953_v40 = vcombine.high %v1320_v13, %v1320_v13  ;;  %v1903_v26 = vcombine.low %v1320_v13, %v1320_v13  ;;  %1963 = vmatprep.subr.bf16.mxu0 %v2170_v5  ;;  %v891_v13 = vrot.slane %v877_v58, %v2402_v25 }
  0xd5   : > { %v2653_v59 = vsel %vm361_vm7, %v360_v44, %v331_v11  ;;  %v2659_v28 = vsel %vm361_vm7, %v827_v63, %v799_v32  ;;  %v1485_v44 = vrot.slane %v1477_v15, %v2402_v25  ;;  %v1478_v63 = vcombine.high %v1468_v4, %v1476_v0  ;;  %1969 = vmatprep.mubr.msk.bf16.mxu0 %vm2171_vm13, %v2170_v5 }
  0xd6   : > { %v1340_v11 = vcombine.high %v1330_v8, %v1338_v45  ;;  %v1943_v15 = vcombine.high %v2692_v1, %v2692_v1  ;;  %v1878_v27 = vcombine.low %v891_v13, %v891_v13  ;;  %v1941_v8 = vcombine.high %v891_v13, %v891_v13 }
  0xd7   : > { %612 = vrot.lane.b32.xlu0 %v1861_v53, %s2163_s5  ;;  %1365 = vrot.lane.b32.xlu1 %v1951_v54, %s2165_s7  ;;  %v1907_v18 = vcombine.low %v1485_v44, %v1485_v44  ;;  %v1956_v57 = vcombine.high %v1485_v44, %v1485_v44  ;;  %v1492_v32 = vrot.slane %v1478_v63, %v2402_v25 }
  0xd8   : > { %v1253_v34 = vpop.permute.xlu0 %1252  ;;  %v1354_v53 = vrot.slane %v1340_v11, %v2402_v25  ;;  %v1875_v58 = vcombine.low %v918_v50, %v918_v50  ;;  %v606_v63 = vrot.slane %v592_v51, %v2402_v25  ;;  %v1937_v51 = vcombine.high %v753_v55, %v753_v55  ;;  %v2781_v12 = vpop.permute.xlu1 %803 }
  0xd9   : > { %v2670_v16 = vsel %vm376_vm12, %v1266_v22, %v1253_v34  ;;  %v1347_v22 = vrot.slane %v1339_v6, %v2402_v25  ;;  %v1911_v0 = vcombine.low %v1492_v32, %v1492_v32  ;;  %v1958_v54 = vcombine.high %v1492_v32, %v1492_v32 }
  0xda   : > { %v1904_v4 = vcombine.low %v1354_v53, %v1354_v53  ;;  %v2702_v34 = vrot.slane %v876_v56, %v2402_v25  ;;  %v1945_v56 = vcombine.high %v1029_v21, %v1029_v21  ;;  %v1940_v6 = vcombine.high %v918_v50, %v918_v50 }
  0xdb   : > { %1503 = vrot.lane.b32.xlu0 %v1955_v2, %s2165_s7  ;;  %1523 = vrot.lane.b32.xlu1 %v1957_v24, %s2168_s10  ;;  %v1900_v46 = vcombine.low %v1347_v22, %v1347_v22  ;;  %v1952_v10 = vcombine.high %v1347_v22, %v1347_v22  ;;  %v1954_v2 = vcombine.high %v1354_v53, %v1354_v53 }
  0xdc   : > { %v1939_v45 = vcombine.high %v2702_v34, %v2702_v34  ;;  %v1885_v24 = vcombine.low %v1029_v21, %v1029_v21  ;;  %v1934_v30 = vcombine.high %v606_v63, %v606_v63  ;;  %v2783_v11 = vpop.permute.xlu0 %335 }
  0xdf   : > { %1513 = vrot.lane.b32.xlu0 %v1910_v20, %s2166_s8  ;;  %1385 = vrot.lane.b32.xlu1 %v1953_v40, %s2168_s10  ;;  %v1886_v20 = vcombine.low %v1063_v42, %v1063_v42  ;;  %v271_v40 = vcombine.high %v2454_v9, %v2457_v14  ;;  %v1929_v9 = vcombine.high %v2602_v7, %v2602_v7 }
  0xe0   : > { %v319_v7 = vrot.slane %v305_v48, %v2402_v25 }
  0xe1   : > { %v285_v44 = vrot.slane %v271_v40, %v2402_v25 }
  0xe2   : > { %v1851_v19 = vcombine.low %v319_v7, %v319_v7  ;;  %v1926_v41 = vcombine.high %v319_v7, %v319_v7 }
  0xe3   : > { %1375 = vrot.lane.b32.xlu0 %v1903_v26, %s2166_s8  ;;  %1498 = vrot.lane.b32.xlu1 %v1907_v18, %s2163_s5  ;;  %v1850_v14 = vcombine.low %v285_v44, %v285_v44  ;;  %v787_v26 = vrot.slane %v773_v62, %v2402_v25  ;;  %v1865_v18 = vcombine.low %v606_v63, %v606_v63 }
  0xe4   : > { %v1925_v25 = vcombine.high %v285_v44, %v285_v44 }
  0xe5   : > { %v1872_v38 = vcombine.low %v787_v26, %v787_v26  ;;  %v1938_v3 = vcombine.high %v787_v26, %v787_v26 }
  0xe7   : > { %1360 = vrot.lane.b32.xlu0 %v1900_v46, %s2163_s5  ;;  %1508 = vrot.lane.b32.xlu1 %v1956_v57, %s2164_s6 }
  0xeb   : > { %1518 = vrot.lane.b32.xlu0 %v1911_v0, %s2167_s9  ;;  %1370 = vrot.lane.b32.xlu1 %v1952_v10, %s2164_s6 }
  0xef   : > { %1528 = vrot.lane.b32.xlu0 %v1958_v54, %s2169_s11  ;;  %1380 = vrot.lane.b32.xlu1 %v1904_v4, %s2167_s9 }
  0xf3   : > { %1074 = vrot.lane.b32.xlu0 %v1943_v15, %s2165_s7  ;;  %1390 = vrot.lane.b32.xlu1 %v1954_v2, %s2169_s11 }
  0xf7   : > { %936 = vrot.lane.b32.xlu0 %v1939_v45, %s2165_s7  ;;  %1084 = vrot.lane.b32.xlu1 %v1885_v24, %s2166_s8 }
  0xfb   : > { %1094 = vrot.lane.b32.xlu0 %v1945_v56, %s2168_s10  ;;  %946 = vrot.lane.b32.xlu1 %v1878_v27, %s2166_s8 }
  0xff   : > { %1069 = vrot.lane.b32.xlu0 %v1882_v33, %s2163_s5  ;;  %956 = vrot.lane.b32.xlu1 %v1941_v8, %s2168_s10 }
 0x103   : > { %1079 = vrot.lane.b32.xlu0 %v1944_v52, %s2164_s6  ;;  %931 = vrot.lane.b32.xlu1 %v1875_v58, %s2163_s5 }
 0x107   : > { %941 = vrot.lane.b32.xlu0 %v1940_v6, %s2164_s6  ;;  %1089 = vrot.lane.b32.xlu1 %v1886_v20, %s2167_s9 }
 0x10b   : > { %951 = vrot.lane.b32.xlu0 %v1879_v37, %s2167_s9  ;;  %1099 = vrot.lane.b32.xlu1 %v1946_v43, %s2169_s11 }
 0x10f   : > { %961 = vrot.lane.b32.xlu0 %v1942_v60, %s2169_s11  ;;  %499 = vrot.lane.b32.xlu1 %v1929_v9, %s2168_s10 }
 0x113   : > { %340 = vrot.lane.b32.xlu0 %v1850_v14, %s2166_s8  ;;  %808 = vrot.lane.b32.xlu1 %v1871_v47, %s2166_s8 }
 0x117   : > { %632 = vrot.lane.b32.xlu0 %v1865_v18, %s2167_s9  ;;  %504 = vrot.lane.b32.xlu1 %v1930_v35, %s2169_s11 }
 0x11b   : > { %345 = vrot.lane.b32.xlu0 %v1851_v19, %s2167_s9  ;;  %813 = vrot.lane.b32.xlu1 %v1872_v38, %s2167_s9 }
 0x11f   : > { %637 = vrot.lane.b32.xlu0 %v1933_v39, %s2168_s10  ;;  %642 = vrot.lane.b32.xlu1 %v1934_v30, %s2169_s11 }
 0x123   : > { %350 = vrot.lane.b32.xlu0 %v1925_v25, %s2168_s10  ;;  %355 = vrot.lane.b32.xlu1 %v1926_v41, %s2169_s11 }
 0x127   : > { %818 = vrot.lane.b32.xlu0 %v1937_v51, %s2168_s10 }
 0x12b   : > { %823 = vrot.lane.b32.xlu0 %v1938_v3, %s2169_s11 }
 0x135   : > { %v480_v22 = vpop.permute.xlu1 %479 }
 0x139   : > { %v475_v46 = vpop.permute.xlu1 %474 }
 0x13a   : > { %v508_v57 = vsel %vm357_vm6, %v2564_v49, %v475_v46 }
 0x13b   : > { %v510_v32 = vsel %vm361_vm7, %v508_v57, %v480_v22 }
 0x13d   : > { %v618_v0 = vpop.permute.xlu0 %617  ;;  %v485_v10 = vpop.permute.xlu1 %484 }
 0x13e   : > { %v512_v53 = vsel %vm364_vm8, %v510_v32, %v485_v10 }
 0x141   : > { %v490_v54 = vpop.permute.xlu0 %489  ;;  %v623_v4 = vpop.permute.xlu1 %622 }
 0x142   : > { %v514_v15 = vsel %vm367_vm9, %v512_v53, %v490_v54 }
 0x145   : > { %v628_v2 = vpop.permute.xlu0 %627  ;;  %v495_v21 = vpop.permute.xlu1 %494 }
 0x146   : > { %v2791_v45 = vsel %vm370_vm10, %v514_v15, %v495_v21 }
 0x149   : > { %v613_v24 = vpop.permute.xlu0 %612  ;;  %v1366_v13 = vpop.permute.xlu1 %1365 }
 0x14a   : > { %v646_v49 = vsel %vm357_vm6, %v2594_v36, %v613_v24 }
 0x14b   : > { %v648_v56 = vsel %vm361_vm7, %v646_v49, %v618_v0 }
 0x14c   : > { %v650_v27 = vsel %vm364_vm8, %v648_v56, %v623_v4 }
 0x14d   : > { %v1504_v29 = vpop.permute.xlu0 %1503  ;;  %v1524_v33 = vpop.permute.xlu1 %1523  ;;  %v2798_v8 = vsel %vm367_vm9, %v650_v27, %v628_v2 }
 0x151   : > { %v1514_v50 = vpop.permute.xlu0 %1513  ;;  %v1386_v52 = vpop.permute.xlu1 %1385 }
 0x155   : > { %v1376_v58 = vpop.permute.xlu0 %1375  ;;  %v1499_v42 = vpop.permute.xlu1 %1498 }
 0x156   : > { %v1532_v6 = vsel %vm357_vm6, %v2649_v23, %v1499_v42 }
 0x157   : > { %v1534_v61 = vsel %vm361_vm7, %v1532_v6, %v1504_v29 }
 0x159   : > { %v1361_v20 = vpop.permute.xlu0 %1360  ;;  %v1509_v36 = vpop.permute.xlu1 %1508 }
 0x15a   : > { %v1536_v40 = vsel %vm364_vm8, %v1534_v61, %v1509_v36  ;;  %v1394_v38 = vsel %vm357_vm6, %v2632_v17, %v1361_v20 }
 0x15b   : > { %v1538_v37 = vsel %vm367_vm9, %v1536_v40, %v1514_v50  ;;  %v1396_v3 = vsel %vm361_vm7, %v1394_v38, %v1366_v13 }
 0x15d   : > { %v1519_v31 = vpop.permute.xlu0 %1518  ;;  %v1371_v43 = vpop.permute.xlu1 %1370 }
 0x15e   : > { %v1540_v44 = vsel %vm370_vm10, %v1538_v37, %v1519_v31  ;;  %v1398_v22 = vsel %vm364_vm8, %v1396_v3, %v1371_v43 }
 0x15f   : > { %v1542_v9 = vsel %vm373_vm11, %v1540_v44, %v1524_v33  ;;  %v1400_v10 = vsel %vm367_vm9, %v1398_v22, %v1376_v58  ;;  %v1554_v33 = vrot.slane %v2670_v16, 4 }
 0x161   : > { %v1529_v55 = vpop.permute.xlu0 %1528  ;;  %v1381_v60 = vpop.permute.xlu1 %1380 }
 0x162   : > { %v1544_v14 = vsel %vm376_vm12, %v1542_v9, %v1529_v55  ;;  %v1402_v53 = vsel %vm370_vm10, %v1400_v10, %v1381_v60  ;;  %v366_v9 = vsel %vm364_vm8, %v2653_v59, %v2783_v11 }
 0x163   : > { %v1579_v23 = vsel %vm1557_vm14, %v1544_v14, 0  ;;  %v1404_v24 = vsel %vm373_vm11, %v1402_v53, %v1386_v52 }
 0x164   : > { %1964 = vmatpush3.bf16.msra.mxu0 %v1579_v23 }
 0x165   : > { %v1075_v47 = vpop.permute.xlu0 %1074  ;;  %v1391_v48 = vpop.permute.xlu1 %1390  ;;  %1965 = vmatprep.subr.bf16.mxu0 %v2170_v5 }
 0x166   : > { %v1406_v13 = vsel %vm376_vm12, %v1404_v24, %v1391_v48 }
 0x167   : > { %v1556_v58 = vrot.slane %v1406_v13, 2 }
 0x169   : > { %v937_v62 = vpop.permute.xlu0 %936  ;;  %v1085_v63 = vpop.permute.xlu1 %1084 }
 0x16d   : > { %v1095_v7 = vpop.permute.xlu0 %1094  ;;  %v947_v26 = vpop.permute.xlu1 %946 }
 0x171   : > { %v1070_v18 = vpop.permute.xlu0 %1069  ;;  %v957_v35 = vpop.permute.xlu1 %956 }
 0x172   : > { %v1103_v19 = vsel %vm357_vm6, %v2692_v1, %v1070_v18  ;;  %v831_v18 = vsel %vm364_vm8, %v2659_v28, %v2781_v12 }
 0x173   : > { %v1105_v39 = vsel %vm361_vm7, %v1103_v19, %v1075_v47 }
 0x175   : > { %v1080_v30 = vpop.permute.xlu0 %1079  ;;  %v932_v25 = vpop.permute.xlu1 %931 }
 0x176   : > { %v1107_v41 = vsel %vm364_vm8, %v1105_v39, %v1080_v30  ;;  %v965_v51 = vsel %vm357_vm6, %v2702_v34, %v932_v25 }
 0x177   : > { %v967_v57 = vsel %vm361_vm7, %v965_v51, %v937_v62  ;;  %v1109_v1 = vsel %vm367_vm9, %v1107_v41, %v1085_v63  ;;  %v1574_v51 = vld [vmem:[%s2929_s1] sm:$0xf] }
 0x179   : > { %v942_v46 = vpop.permute.xlu0 %941  ;;  %v1090_v32 = vpop.permute.xlu1 %1089 }
 0x17a   : > { %v969_v17 = vsel %vm364_vm8, %v967_v57, %v942_v46  ;;  %v1111_v0 = vsel %vm370_vm10, %v1109_v1, %v1090_v32 }
 0x17b   : > { %v971_v34 = vsel %vm367_vm9, %v969_v17, %v947_v26  ;;  %v1113_v4 = vsel %vm373_vm11, %v1111_v0, %v1095_v7 }
 0x17d   : > { %v952_v54 = vpop.permute.xlu0 %951  ;;  %v1100_v15 = vpop.permute.xlu1 %1099 }
 0x17e   : > { %v973_v2 = vsel %vm370_vm10, %v971_v34, %v952_v54  ;;  %v1115_v21 = vsel %vm376_vm12, %v1113_v4, %v1100_v15 }
 0x17f   : > { %v1552_v49 = vrot.slane %v1115_v21, 6  ;;  %v975_v27 = vsel %vm373_vm11, %v973_v2, %v957_v35 }
 0x181   : > { %v962_v56 = vpop.permute.xlu0 %961  ;;  %v500_v29 = vpop.permute.xlu1 %499 }
 0x182   : > { %v977_v50 = vsel %vm376_vm12, %v975_v27, %v962_v56  ;;  %v518_v55 = vsel %vm373_vm11, %v2791_v45, %v500_v29 }
 0x183   : > { %v1568_v42 = vsel %vm1557_vm14, %v977_v50, %v1552_v49 }
 0x184   : > { %v1570_v6 = vsel %vm1560_vm15, %v1568_v42, %v1554_v33 }
 0x185   : > { %v341_v20 = vpop.permute.xlu0 %340  ;;  %v809_v52 = vpop.permute.xlu1 %808  ;;  %v1572_v61 = vsel %vm1563_vm0, %v1570_v6, %v1556_v58 }
 0x186   : > { %1966 = vmatpush3.bf16.msra.mxu0 %v1572_v61  ;;  %v369_v14 = vsel %vm367_vm9, %v366_v9, %v341_v20  ;;  %v833_v35 = vsel %vm367_vm9, %v831_v18, %v809_v52 }
 0x187   : > { %1967 = vmatprep.subr.bf16.mxu0 %v2170_v5 }
 0x189   : > { %v633_v36 = vpop.permute.xlu0 %632  ;;  %v505_v40 = vpop.permute.xlu1 %504 }
 0x18a   : > { %v654_v16 = vsel %vm370_vm10, %v2798_v8, %v633_v36  ;;  %v520_v5 = vsel %vm376_vm12, %v518_v55, %v505_v40 }
 0x18b   : > { %v1546_v62 = vrot.slane %v520_v5, 6 }
 0x18d   : > { %v346_v31 = vpop.permute.xlu0 %345  ;;  %v814_v37 = vpop.permute.xlu1 %813 }
 0x18e   : > { %v372_v47 = vsel %vm370_vm10, %v369_v14, %v346_v31  ;;  %v835_v19 = vsel %vm370_vm10, %v833_v35, %v814_v37 }
 0x191   : > { %v638_v43 = vpop.permute.xlu0 %637  ;;  %v643_v44 = vpop.permute.xlu1 %642 }
 0x192   : > { %v656_v60 = vsel %vm373_vm11, %v654_v16, %v638_v43 }
 0x193   : > { %v658_v23 = vsel %vm376_vm12, %v656_v60, %v643_v44 }
 0x194   : > { %v1548_v45 = vrot.slane %v658_v23, 4 }
 0x195   : > { %v351_v8 = vpop.permute.xlu0 %350  ;;  %v356_v48 = vpop.permute.xlu1 %355 }
 0x196   : > { %v375_v63 = vsel %vm373_vm11, %v372_v47, %v351_v8 }
 0x197   : > { %v378_v7 = vsel %vm376_vm12, %v375_v63, %v356_v48 }
 0x198   : > { %v1559_v26 = vsel %vm1557_vm14, %v378_v7, %v1546_v62 }
 0x199   : > { %v819_v59 = vpop.permute.xlu0 %818  ;;  %v1562_v11 = vsel %vm1560_vm15, %v1559_v26, %v1548_v45 }
 0x19a   : > { %v837_v38 = vsel %vm373_vm11, %v835_v19, %v819_v59 }
 0x19d   : > { %v824_v39 = vpop.permute.xlu0 %823 }
 0x19e   : > { %v839_v30 = vsel %vm376_vm12, %v837_v38, %v824_v39 }
 0x19f   : > { %v1550_v25 = vrot.slane %v839_v30, 2 }
 0x1a1   : > { %v1565_v41 = vsel %vm1563_vm0, %v1562_v11, %v1550_v25 }
 0x1a2   : > { %1968 = vmatpush3.bf16.msra.mxu0 %v1565_v41 }
 0x1a5   : > { %1970 = vmatmul.mubr.msk.bf16.vlgmr.msra.gmra.mxu0 %vm1575_vm1, %v1574_v51 }
 0x265   : > { %v1615_v28 = vpop.f32.mrf.mxu0 }
 0x266   : > { %v1621_v12 = vpack.c.bf16 %v1615_v28, %v1615_v28  ;;  %1623 = vadd.xlane.f32.xlu1 %v1615_v28 }
 0x267   : > { %v1971_v3 = vpop.f32.mrf.mxu0 }
 0x268   : > { %1622 = vst [vmem:[%s202_s29] sm:$0xf] %v1621_v12 }
 0x269   : > { %v1618_v22 = vpop.f32.mrf.mxu0 }
 0x26b   : > { %v1972_v46 = vpop.f32.mrf.mxu0 }
 0x2ef   : > { %v1624_v57 = vpop.xlane.xlu1 %1623 }
 0x2f0   : > { %v1625_v1 = vmul.f32 0.0078125, %v1624_v57 }
 0x2f2   : > { %v1626_v32 = vsub.f32 %v1615_v28, %v1625_v1 }
 0x2f4   : > { %v1627_v17 = vmul.f32 %v1626_v32, %v1626_v32 }
 0x2f6   : > { %1628 = vadd.xlane.f32.xlu0 %v1627_v17 }
 0x37b   : > { %1633 = sbr.rel (%p1915_p13) target bundleno = 899 (0x383), region = 32 }
 0x37f   : > { %v1629_v0 = vpop.xlane.xlu0 %1628 }
 0x380   : > { %vm1634_vm2 = vcmask 7168   ;;  %vm1636_vm3 = vcmask 15360  }
 0x381   : > { %v1635_v10 = vsel %vm1634_vm2, %v1625_v1, %v1629_v0 }
 0x382   : > { %1637 = vst.msk [vmem:[#allocation2] sm:$0xff] %vm1636_vm3, %v1635_v10 }
 0x383 PF: > { %p1916_p0 = scmp.le.s32.totalorder %s2141_s15, 0 }
 0x384   : > { %s1643_s4 = scvt.s32.f32 (!%p1916_p0), %s2141_s15  ;;  %s2172_s9 = smov (!%p1916_p0), 1  }
 0x385   : > { %1641 = sbr.rel (%p1916_p0) target bundleno = 1095 (0x447), region = 36 }
 0x386   : > { %s1645_s5 = sadd.f32 (!%p1916_p0), 1.0, %s1643_s4  ;;  %s1654_s6 = smul.f32 (!%p1916_p0), 128.0, %s1643_s4 }
 0x38a   : > { %v1646_v53 = vstv %s1645_s5  ;;  %v1642_v34 = vld [vmem:[#allocation2] sm:$0xff]  ;;  %vm1666_vm4 = vcmask 7168   ;;  %vm1668_vm5 = vcmask 15360  }
 0x38b   : > { %2061 = vrcp.f32 %v1646_v53  ;;  %v1644_v4 = vsub.f32 %v1625_v1, %v1642_v34  ;;  %v1652_v49 = vadd.f32 %v1642_v34, %v1629_v0 }
 0x38d   : > { %v1653_v15 = vmul.f32 %v1644_v4, %v1644_v4 }
 0x398   : > { %v2062_v54 = vpop.eup %2061 }
 0x399   : > { %1974 = vpush %v2062_v54 }
 0x3ca   : > { %s1975_s7 = spop %1974 }
 0x3cb   : > { %s1658_s8 = smul.f32 %s1975_s7, %s1654_s6  ;;  %v1649_v24 = vstv %s1975_s7 }
 0x3cc   : > { %v1650_v13 = vmul.f32 %v1649_v24, %v1644_v4 }
 0x3cd   : > { %v1659_v2 = vstv %s1658_s8 }
 0x3ce   : > { %v1660_v21 = vmul.f32 %v1659_v2, %v1653_v15  ;;  %v1651_v27 = vadd.f32 %v1650_v13, %v1642_v34 }
 0x3d0   : > { %1662 = vrot.lane.b32.xlu0 %v1660_v21, %s2172_s9 }
 0x442   : > { %v1663_v56 = vpop.permute.xlu0 %1662 }
 0x443   : > { %v1665_v29 = vadd.f32 %v1663_v56, %v1652_v49 }
 0x445   : > { %v1667_v33 = vsel %vm1666_vm4, %v1651_v27, %v1665_v29 }
 0x446   : > { %1669 = vst.msk [vmem:[#allocation2] sm:$0xff] %vm1668_vm5, %v1667_v33 }
 0x447 PF: > { %p1917_p1 = scmp.ne.s32.totalorder %s2141_s15, 1 }
 0x449   : > { %1673 = sbr.rel (%p1917_p1) target bundleno = 1125 (0x465), region = 40 }
 0x44e   : > { %v1674_v50 = vld [vmem:[#allocation2] sm:$0xff]  ;;  %vm1679_vm6 = vcmask 7168   ;;  %vm1681_vm7 = vcmask 15360  }
 0x44f   : > { %v1675_v58 = vmul.f32 0.00390625, %v1674_v50 }
 0x451   : > { %v1676_v42 = vmax.f32 %v1675_v58, 0.0 }
 0x453   : > { %v1677_v6 = vadd.f32 1e-05, %v1676_v42 }
 0x455   : > { %2063 = vrsqrt.f32 %v1677_v6 }
 0x462   : > { %v2064_v20 = vpop.eup %2063 }
 0x463   : > { %v1680_v52 = vsel %vm1679_vm6, %v1674_v50, %v2064_v20 }
 0x464   : > { %1682 = vst.msk [vmem:[%s2271_s20] sm:$0xff] %vm1681_vm7, %v1680_v52 }
 0x465 PF: > { %s1919_s10 = sshll.u32 %s2145_s16, 1  ;;  %s1708_s21 = sshll.u32 %s202_s29, 4  ;;  %s1709_s21 = int_to_ptr.vmem [resolvable:$true] %s1708_s21 }
 0x466   : > { %s1704_s11 = sadd.s32 %s2141_s15, %s1919_s10  ;;  %s1684_s7 = scalar_lea.sflag [#allocation4], %s200_s27 }
 0x467   : > { %s1920_s24 = sshll.u32 %s1704_s11, 6  ;;  %s2065_s8 = scalar_lea.vmem %s1709_s21, 64 }
 0x468   : > { %s1706_s6 = scalar_lea.hbm %s2930_s2, %s1920_s24  ;;  %p2066_p2 = scmp.ne.s32.totalorder %s1709_s21, %s2065_s8 }
 0x469   : > { %s2173_s20 = smov [#allocation3]  }
 0x46a   : > { %p2067_p4 = pnand %p2066_p2, %p2245_p3  ;;  %s2069_s9 = sshll.u32 %s2173_s20, 4  ;;  %s2070_s9 = int_to_ptr.vmem [resolvable:$false] %s2069_s9 }
 0x46b   : > { %s2071_s16 = scalar_lea.vmem %s2070_s9, 128  ;;  %p2072_p6 = scmp.lt.s32.totalorder %s1709_s21, %s2070_s9 }
 0x46c   : > { %p2068_p5 = pneg %p2067_p4  ;;  %p2073_p7 = scmp.lt.s32.totalorder %s2071_s16, %s2065_s8 }
 0x46e   : > { %p2074_p9 = por %p2073_p7, %p2072_p6 }
 0x470   : > { %p2075_p10 = pnand %p2074_p9, %p2068_p5 }
 0x472   : > { %2078 = shalt.err (!%p2075_p10)
}
 0x473   : > { %s2079_s15 = scalar_lea.hbm %s1706_s6, 64  ;;  %s2083_s29 = scalar_lea.hbm %s2930_s2, 256 }
 0x474   : > { %p2080_p11 = scmp.ne.s32.totalorder %s1706_s6, %s2079_s15  ;;  %p2084_p0 = scmp.lt.s32.totalorder %s1706_s6, %s2930_s2 }
 0x475   : > { %p2085_p1 = scmp.lt.s32.totalorder %s2083_s29, %s2079_s15 }
 0x476   : > { %p2081_p12 = pnand %p2080_p11, %p2245_p3 }
 0x477   : > { %p2086_p2 = por %p2085_p1, %p2084_p0 }
 0x478   : > { %p2082_p13 = pneg %p2081_p12 }
 0x47a   : > { %p2087_p4 = pnand %p2086_p2, %p2082_p13 }
 0x47c   : > { %2090 = shalt.err (!%p2087_p4)
}
 0x47d   : > { %1976 = dma.vmem_to_hbm [thread:$0]  (%p2245_p3), %s1709_s21, 64, %s1706_s6, %s1684_s7  }
 0x47e PF: > { %p1982_p5 = scmp.ge.s32.totalorder %s2157_s19, 2  ;;  %s1723_s24 = sand.u32 1, %s2129_s12  }
 0x47f   : > { %s1724_s4 = scalar_lea.sflag [#allocation4], %s1723_s24 }
 0x480   : > { %p1979_p6 = pnand %p1982_p5, %p2254_p8 }
 0x482   : > { %p1980_p7 = pneg %p1979_p6 }
 0x484   : > { %2124 = dma.done.wait (%p1980_p7), %s1724_s4, 64  }
 0x485   : > { %2126 = vsyncadd (%p1980_p7), %s1724_s4, 4294967232  ;;  %s17_s19 = sadd.s32 1, %s2157_s19   ;;  %s2938_s12 = smov %s2133_s13 }
 0x486   : > { %p14_p9 = scmp.ge.s32.totalorder %s17_s19, 6   ;;  %s2939_s13 = smov %s2137_s14 }
 0x487   : > { %s2940_s14 = smov %s2263_s30  ;;  %s2941_s15 = smov %s2149_s17 }
 0x488   : > { %s2942_s16 = smov %s2153_s18  ;;  %s2943_s17 = smov %s2946_s22 }
 0x489   : > { %s2944_s18 = smov %s2950_s23  ;;  %16 = sbr.rel (!%p14_p9) target bundleno = 5 (0x5), region = 91 }
 0x48e   :  { %1739 = vsyncpa [#allocation4], 1 }
 0x48f   :  { %1741 = vsyncpa [#allocation4 + $0x1], 1 }

</bundles_post_ra>
